<compile_context>
chip_gen: v7x
topology: tpu7x:2x2x1
jax: 0.10.0
libtpu: 0.0.40
codegen_flags: <defaults>
</compile_context>

<pallas_src>
import jax
import jax.numpy as jnp
from jax.experimental import pallas as pl
from jax.experimental.pallas import tpu as pltpu

LANES = 128
SUBLANES = 8
ACC_ROWS_MAX = 32                        # 4 f32 vregs -> 4 independent add chains
TARGET_TILE_BYTES = 8 * 1024 * 1024      # ~8 MiB/tile, 16 MiB double-buffered
VMEM_LIMIT_BYTES = 32 * 1024 * 1024      # safe on v5e/v6e/v7x


def _round_up(a, b):
    return ((a + b - 1) // b) * b


def _make_kernel(rows, tile_r, tiles_per_split, acc_r, need_mask):
    """abs-sum reduction kernel; all sizing statics baked in via closure.

    Grid: (splits, tiles_per_split).  Axis 0 is 'parallel' (megacore shard on
    v7x), axis 1 is the sequential reduction walk over row tiles.

    x_ref : VMEM (tile_r, 128)   input tile (original dtype, widened in-register)
    o_ref : VMEM (acc_r, 128) f32  per-split partial-sum accumulator
                                   (resident across grid axis 1).
    """

    def kernel(x_ref, o_ref):
        i = pl.program_id(1)

        @pl.when(i == 0)
        def _():
            o_ref[...] = jnp.zeros_like(o_ref)

        x = jnp.abs(x_ref[...].astype(jnp.float32))

        if need_mask:
            # Ragged tail: rows past the logical end of the array contain
            # unspecified data (partial / clamped blocks) -> zero them.
            row0 = (pl.program_id(0) * tiles_per_split + i) * tile_r
            gidx = row0 + jax.lax.broadcasted_iota(jnp.int32, x.shape, 0)
            x = jnp.where(gidx < rows, x, 0.0)

        # Per-(sublane, lane) partial sums into acc_r rows: pure VPU adds in
        # the hot loop (reshape is tile-aligned -> free), no XLU.
        o_ref[...] += jnp.sum(x.reshape(-1, acc_r, LANES), axis=0)

    return kernel


def l1_loss(x, lw):
    """sum(abs(x) * lw), matching L1LossFunc.forward. Returns a 0-d float32."""
    xf = x.reshape(-1)                 # keep original dtype; kernel upcasts
    n = xf.size
    rows = n // LANES                  # full 128-lane rows
    rem = n - rows * LANES             # < 128 leftover elements

    lw_f32 = jnp.asarray(lw, dtype=jnp.float32)

    tail_sum = jnp.float32(0.0)
    if rem:
        # Tiny (<128 elem) remainder handled in plain JAX; only this ragged
        # case pays for a slice of the main body.
        tail_sum = jnp.sum(
            jnp.abs(jax.lax.slice(xf, (n - rem,), (n,)).astype(jnp.float32)))
        xf = jax.lax.slice(xf, (0,), (n - rem,))

    if rows == 0:
        return tail_sum * lw_f32

    x2 = xf.reshape(rows, LANES)       # lane-dense slab, no padding

    itemsize = x.dtype.itemsize
    # Dtype-derived tile rows targeting ~8 MiB/tile; multiple of ACC_ROWS_MAX.
    max_tile_r = max(
        ACC_ROWS_MAX,
        (TARGET_TILE_BYTES // (LANES * itemsize)) // ACC_ROWS_MAX * ACC_ROWS_MAX,
    )
    # Sublane alignment for packed dtypes (f32:8, bf16:16, int8:32).
    sub_align = SUBLANES * max(1, 4 // itemsize)

    if rows <= 2 * sub_align:
        tile_r = rows                  # single tiny tile (== full dim)
    else:
        # At least two tiles so the 'parallel' axis can shard across both
        # TensorCores on v7x; capped at ~TARGET_TILE_BYTES per tile.
        tile_r = min(max_tile_r, _round_up(pl.cdiv(rows, 2), sub_align))

    n_tiles = pl.cdiv(rows, tile_r)
    splits = 2 if n_tiles >= 2 else 1
    tiles_per_split = pl.cdiv(n_tiles, splits)
    # Mask whenever the grid covers more rows than exist (partial or
    # clamped-duplicate blocks); decided at trace time.
    need_mask = splits * tiles_per_split * tile_r != rows

    acc_r = ACC_ROWS_MAX
    while tile_r % acc_r:
        acc_r //= 2

    kernel = _make_kernel(rows, tile_r, tiles_per_split, acc_r, need_mask)

    # Clamp the input block index so an odd tile count never produces a block
    # fully outside the array (the mask zeroes its contribution anyway).
    def in_index_map(c, i, _t=tiles_per_split, _n=n_tiles):
        return (jnp.minimum(c * _t + i, _n - 1), 0)

    partials = pl.pallas_call(
        kernel,
        out_shape=jax.ShapeDtypeStruct((splits, acc_r, LANES), jnp.float32),
        grid_spec=pl.GridSpec(
            grid=(splits, tiles_per_split),
            in_specs=[pl.BlockSpec((tile_r, LANES), in_index_map)],
            # Lane-dense accumulator block as the output; resident across the
            # reduction axis (same block index for all i).
            out_specs=pl.BlockSpec((None, acc_r, LANES), lambda c, i: (c, 0, 0)),
        ),
        compiler_params=pltpu.CompilerParams(
            dimension_semantics=("parallel", "arbitrary"),
            vmem_limit_bytes=VMEM_LIMIT_BYTES,
        ),
    )(x2)

    # Final cross-lane reduce + lw multiply hoisted out of the hot loop
    # (algebraically identical while lw is a scalar).
    return (jnp.sum(partials) + tail_sum) * lw_f32


if __name__ == "__main__":
    key = jax.random.PRNGKey(0)
    x = jax.random.normal(key, (2, 4, 16, 16), dtype=jnp.float32)

    # Deterministic parameter matching L1Loss.__init__ default: lw = 1.0
    lw = jnp.float32(1.0)

    result = jax.block_until_ready(l1_loss(x, lw))

    # Reference check (plain JAX) to make sure semantics match.
    ref = jnp.sum(jnp.abs(x) * lw)
    assert jnp.allclose(result, ref, rtol=1e-5, atol=1e-5), (result, ref)

    # TODO(synk): custom backward (soft-threshold grads) not implemented; only
    # the forward pass is translated.
    print("KERNEL_OK")
</pallas_src>

<mosaic_0001>
module attributes {stable_mosaic.version = 11 : i64} {
  func.func @kernel(%arg0: i32, %arg1: i32, %arg2: memref<16x128xf32, #tpu.memory_space<vmem>>, %arg3: memref<1x16x128xf32, #tpu.memory_space<vmem>>) attributes {dimension_semantics = [#tpu.dimension_semantics<parallel>, #tpu.dimension_semantics<arbitrary>], iteration_bounds = array<i64: 1, 1>, scalar_prefetch = 0 : i64, scratch_operands = 0 : i64, tpu.core_type = #tpu.core_type<tc>, window_params = [{transform_indices = @transform_0, window_bounds = array<i64: 16, 128>}, {transform_indices = @transform_1, window_bounds = array<i64: 1, 16, 128>}]} {
    %c0_i32 = arith.constant 0 : i32
    %0 = arith.cmpi eq, %arg1, %c0_i32 : i32
    %1 = arith.extui %0 : i1 to i32
    %c0_i32_0 = arith.constant 0 : i32
    %2 = arith.cmpi ne, %1, %c0_i32_0 : i32
    scf.if %2 {
      %cst_8 = arith.constant 0.000000e+00 : f32
      %13 = vector.broadcast %cst_8 : f32 to vector<16x128xf32>
      %c0_9 = arith.constant 0 : index
      %c0_10 = arith.constant 0 : index
      %c0_11 = arith.constant 0 : index
      %14 = vector.load %arg3[%c0_9, %c0_10, %c0_11] : memref<1x16x128xf32, #tpu.memory_space<vmem>>, vector<1x16x128xf32>
      %15 = vector.shape_cast %14 : vector<1x16x128xf32> to vector<16x128xf32>
      %16 = vector.shape_cast %13 : vector<16x128xf32> to vector<1x16x128xf32>
      tpu.vector_store %arg3[%c0_9, %c0_10, %c0_11], %16 {strides = array<i32>} : memref<1x16x128xf32, #tpu.memory_space<vmem>>, vector<1x16x128xf32>,
    } else {
    }
    %c0 = arith.constant 0 : index
    %c0_1 = arith.constant 0 : index
    %3 = vector.load %arg2[%c0, %c0_1] : memref<16x128xf32, #tpu.memory_space<vmem>>, vector<16x128xf32>
    %4 = math.absf %3 : vector<16x128xf32>
    %c0_2 = arith.constant 0 : index
    %c0_3 = arith.constant 0 : index
    %c0_4 = arith.constant 0 : index
    %5 = vector.load %arg3[%c0_2, %c0_3, %c0_4] : memref<1x16x128xf32, #tpu.memory_space<vmem>>, vector<1x16x128xf32>
    %6 = vector.shape_cast %5 : vector<1x16x128xf32> to vector<16x128xf32>
    %7 = vector.shape_cast %4 : vector<16x128xf32> to vector<1x16x128xf32>
    %cst = arith.constant dense<0.000000e+00> : vector<16x128xf32>
    %8 = vector.multi_reduction <add>, %7, %cst [0] : vector<1x16x128xf32> to vector<16x128xf32>
    %9 = arith.addf %6, %8 : vector<16x128xf32>
    %c0_5 = arith.constant 0 : index
    %c0_6 = arith.constant 0 : index
    %c0_7 = arith.constant 0 : index
    %10 = vector.load %arg3[%c0_5, %c0_6, %c0_7] : memref<1x16x128xf32, #tpu.memory_space<vmem>>, vector<1x16x128xf32>
    %11 = vector.shape_cast %10 : vector<1x16x128xf32> to vector<16x128xf32>
    %12 = vector.shape_cast %9 : vector<16x128xf32> to vector<1x16x128xf32>
    tpu.vector_store %arg3[%c0_5, %c0_6, %c0_7], %12 {strides = array<i32>} : memref<1x16x128xf32, #tpu.memory_space<vmem>>, vector<1x16x128xf32>,
    return
  }
  func.func @transform_0(%arg0: i32, %arg1: i32) -> (i32, i32) {
    %c1_i32 = arith.constant 1 : i32
    %0 = arith.muli %arg0, %c1_i32 : i32
    %1 = arith.addi %0, %arg1 : i32
    %c0_i32 = arith.constant 0 : i32
    %2 = arith.minsi %1, %c0_i32 : i32
    %c0_i32_0 = arith.constant 0 : i32
    %c0_i32_1 = arith.constant 0 : i32
    return %2, %c0_i32_0 : i32, i32
  }
  func.func @transform_1(%arg0: i32, %arg1: i32) -> (i32, i32, i32) {
    %c0_i32 = arith.constant 0 : i32
    %c0_i32_0 = arith.constant 0 : i32
    %c0_i32_1 = arith.constant 0 : i32
    return %arg0, %c0_i32, %c0_i32_0 : i32, i32, i32
  }
}

</mosaic_0001>

<bundles_post_ra>
// kernel: tpu_custom_call.1
= control target key start
LH: loop header
LB: loop body
LE: loop exit
PB: predicated region body
PF: predicated region fallthrough
CT: control target
= control target key end

     0   :  { %6 = vsyncpa [#allocation3], 0  ;;  %s161_s0 = inlined_call_operand.hbm [shape: f32[16,128], index: 0, kind: input, shape index: {}]   ;;  %s162_s1 = inlined_call_operand.hbm [shape: f32[1,16,128], index: 1, kind: output, shape index: {}]  }
   0x1   :  { %7 = vsyncpa [#allocation4], 0  ;;  %s123_s6 = smov [#allocation2]   ;;  %s75_s10 = scalar_lea.hbm %s161_s0, 256 }
   0x2   :  { %s19_s7 = sshll.u32 %s123_s6, 4  ;;  %p76_p0 = scmp.ne.s32.totalorder %s161_s0, %s75_s10  ;;  %s20_s7 = int_to_ptr.vmem [resolvable:$true] %s19_s7 }
   0x3   :  { %p79_p1 = scmp.lt.u32.totalorder %s75_s10, %s161_s0 }
   0x5   :  { %p81_p2 = pnand %p79_p1, %p76_p0 }
   0x7   :  { %84 = shalt.err (!%p81_p2)
}
   0x8   :  { %s85_s15 = scalar_lea.vmem %s20_s7, 256  ;;  %p90_p4 = scmp.lt.s32.totalorder %s20_s7, %s20_s7 }
   0x9   :  { %p86_p3 = scmp.ne.s32.totalorder %s20_s7, %s85_s15  ;;  %p91_p5 = scmp.lt.s32.totalorder %s85_s15, %s85_s15 }
   0xb   :  { %p92_p6 = por %p91_p5, %p90_p4 }
   0xd   :  { %p93_p7 = pnand %p92_p6, %p86_p3 }
   0xf   :  { %96 = shalt.err (!%p93_p7)
}
  0x10   :  { %s124_s16 = smov 128   ;;  %s125_s17 = smov 8  }
  0x11   :  { %25 = dma.hbm_to_vmem [thread:$0]  %s161_s0, 256, %s20_s7, [#allocation3], %s124_s16, %s124_s16, %s125_s17  }
  0x12   :  { %119 = dma.done.wait [#allocation3], 256  }
  0x13   :  { %120 = vsyncadd [#allocation3], 4294967040  ;;  %v39_v0 = vld [vmem:[#allocation2] sm:$0xff]  ;;  %v40_v1 = vld [vmem:[#allocation2 + $0x8] sm:$0xff]  ;;  %s126_s20 = smov [#allocation5]  }
  0x14   :  { %s56_s21 = sshll.u32 %s126_s20, 4  ;;  %v41_v2 = vand.u32 2147483647, %v39_v0  ;;  %v42_v3 = vand.u32 2147483647, %v40_v1  ;;  %s57_s21 = int_to_ptr.vmem [resolvable:$true] %s56_s21 }
  0x15   :  { %s97_s22 = scalar_lea.vmem %s57_s21, 256  ;;  %p102_p9 = scmp.lt.s32.totalorder %s57_s21, %s57_s21 }
  0x16   :  { %49 = vst [vmem:[#allocation5] sm:$0xff] %v41_v2  ;;  %50 = vst [vmem:[#allocation5 + $0x8] sm:$0xff] %v42_v3  ;;  %p98_p8 = scmp.ne.s32.totalorder %s57_s21, %s97_s22  ;;  %p103_p10 = scmp.lt.s32.totalorder %s97_s22, %s97_s22 }
  0x18   :  { %p104_p11 = por %p103_p10, %p102_p9 }
  0x1a   :  { %p105_p12 = pnand %p104_p11, %p98_p8 }
  0x1c   :  { %108 = shalt.err (!%p105_p12)
}
  0x1d   :  { %s109_s24 = scalar_lea.hbm %s162_s1, 256 }
  0x1e   :  { %p110_p13 = scmp.ne.s32.totalorder %s162_s1, %s109_s24  ;;  %p113_p0 = scmp.lt.u32.totalorder %s109_s24, %s162_s1 }
  0x20   :  { %p115_p1 = pnand %p113_p0, %p110_p13 }
  0x22   :  { %118 = shalt.err (!%p115_p1)
}
  0x23   :  { %62 = dma.vmem_to_hbm [thread:$0]  %s57_s21, 256, %s162_s1, [#allocation4], %s124_s16, %s124_s16, %s125_s17  }
  0x24   :  { %121 = dma.done.wait [#allocation4], 256  }
  0x25   :  { %122 = vsyncadd [#allocation4], 4294967040 }
  0x26   :  { %66 = vsyncpa [#allocation3], 1 }
  0x27   :  { %67 = vsyncpa [#allocation4], 1 }

</bundles_post_ra>
